<compile_context>
chip_gen: v7x
topology: tpu7x:2x2x1
jax: 0.10.0
libtpu: 0.0.40
codegen_flags: <defaults>
</compile_context>

<pallas_src>
import jax
import jax.numpy as jnp
from jax.experimental import pallas as pl
from jax.experimental.pallas import tpu as pltpu


# Offsets of each layer's weights/biases inside the flat (57,) SMEM vector.
# Weights are stored row-major as (in_features, out_features).
_W1, _B1 = 0, 8       # w1 (2,4)=8,  b1 (4)
_W2, _B2 = 12, 28     # w2 (4,4)=16, b2 (4)
_W3, _B3 = 32, 48     # w3 (4,4)=16, b3 (4)
_W4, _B4 = 52, 56     # w4 (4,1)=4,  b4 (1)
_NPARAMS = 57

_SUB = 8                      # sublane rows per inner sub-tile (one vreg/channel)
_LANE = 128                   # lane width
_TILE = _SUB * _LANE          # 1024 samples per (8,128) sub-tile
_MAX_BLOCK_SAMPLES = 128 * 1024   # ~1.5 MiB in + 0.5 MiB out per buffer


def mlp2_kernel(p_ref, x_ref, o_ref):
    """Fused MLP2 on one lane-dense block.

    p_ref : SMEM (57,)          f32  -- all weights/biases (scalar prefetch)
    x_ref : VMEM (2, R, 128)    f32  -- feature-major input block
    o_ref : VMEM (R, 128)       f32  -- output block
    """
    # Hoist all 57 scalar reads out of the MAC chain / sub-tile loop.
    p = [p_ref[i] for i in range(_NPARAMS)]

    def linear(inputs, w_off, b_off, fin, fout):
        # out_j = sum_k w[k, j] * in_k + b_j, fully unrolled (fin, fout <= 4).
        outs = []
        for j in range(fout):
            acc = inputs[0] * p[w_off + j] + p[b_off + j]
            for k in range(1, fin):
                acc = acc + inputs[k] * p[w_off + k * fout + j]
            outs.append(acc)
        return outs

    n_tiles = x_ref.shape[1] // _SUB

    @pl.loop(0, n_tiles)
    def _(t):
        r = pl.multiple_of(t * _SUB, _SUB)
        xs = [x_ref[k, pl.ds(r, _SUB), :] for k in range(2)]   # two (8,128) tiles
        h = [jnp.tanh(v) for v in linear(xs, _W1, _B1, 2, 4)]
        h = [jnp.tanh(v) for v in linear(h, _W2, _B2, 4, 4)]
        h = [jnp.tanh(v) for v in linear(h, _W3, _B3, 4, 4)]
        o_ref[pl.ds(r, _SUB), :] = linear(h, _W4, _B4, 4, 1)[0]


def _round_up(n, m):
    return ((n + m - 1) // m) * m


def _grid_semantics():
    """Batch-axis semantics: CORE_PARALLEL only on multi-TensorCore chips."""
    try:
        kind = jax.devices()[0].device_kind.lower()
    except Exception:
        kind = ""
    if "v7" in kind or "7x" in kind:          # v7x: 2 TensorCores / chip
        return (pltpu.CORE_PARALLEL,), 2
    return ("parallel",), 1                   # v5e / v6e: single TC


def pack_params(params):
    """Flatten all weights/biases into one f32 vector for SMEM residency.

    NOTE: weights must already be (in_features, out_features); transpose real
    PyTorch nn.Linear weights ((out,in)) before packing.
    """
    order = ("w1", "b1", "w2", "b2", "w3", "b3", "w4", "b4")
    return jnp.concatenate(
        [params[k].reshape(-1).astype(jnp.float32) for k in order])


def mlp2_reference(x, params):
    """Plain-JAX reference (also the small-batch fast path)."""
    h = jnp.tanh(x @ params["w1"] + params["b1"])
    h = jnp.tanh(h @ params["w2"] + params["b2"])
    h = jnp.tanh(h @ params["w3"] + params["b3"])
    return h @ params["w4"] + params["b4"]


def mlp2_forward(x, params, *, block_samples=None, min_kernel_batch=2048,
                 force_kernel=False, x_feature_major=False):
    """Run MLP2.

    x:      (B, 2) float32, or (2, B) if x_feature_major=True (avoids the
            wrapper-side relayout entirely).
    params: dict with w1 (2,4), b1 (1,4), w2 (4,4), b2 (1,4),
                      w3 (4,4), b3 (1,4), w4 (4,1), b4 (1,1)
    returns (B, 1) float32
    """
    B = x.shape[1] if x_feature_major else x.shape[0]
    if B == 0:
        return jnp.zeros((0, 1), jnp.float32)

    if not force_kernel and B < min_kernel_batch:
        # Tiny batches can never amortize kernel launch / padding cost.
        xb = x.T if x_feature_major else x
        return mlp2_reference(xb.astype(jnp.float32), params)

    semantics, n_cores = _grid_semantics()

    Bp = _round_up(B, _TILE)
    if block_samples is None:
        block_samples = min(_MAX_BLOCK_SAMPLES, Bp)
        if n_cores > 1 and Bp >= n_cores * _TILE:
            # Guarantee at least one block per TensorCore.
            block_samples = min(block_samples,
                                _round_up(pl.cdiv(Bp, n_cores), _TILE))
    block_samples = max(_TILE, _round_up(block_samples, _TILE))
    Bp = _round_up(Bp, block_samples)
    R = block_samples // _LANE          # sublane rows per block (multiple of 8)
    n_blocks = Bp // block_samples

    # Feature-major, lane-dense layout: sample s -> (row s//128, lane s%128).
    # TODO(synk): the (B,2)->(2,B) relayout could be fused into the kernel with
    # an XLU lane de-interleave to save ~16 B/sample of HBM traffic on v5e.
    xt = (x if x_feature_major else x.T).astype(jnp.float32)   # (2, B)
    if Bp != B:
        xt = jnp.pad(xt, ((0, 0), (0, Bp - B)))
    xt = xt.reshape(2, Bp // _LANE, _LANE)

    flat = pack_params(params)

    out = pl.pallas_call(
        mlp2_kernel,
        out_shape=jax.ShapeDtypeStruct((Bp // _LANE, _LANE), jnp.float32),
        grid_spec=pltpu.PrefetchScalarGridSpec(
            num_scalar_prefetch=1,                 # 57 params -> SMEM
            grid=(n_blocks,),
            in_specs=[pl.BlockSpec((2, R, _LANE), lambda i, p: (0, i, 0))],
            out_specs=pl.BlockSpec((R, _LANE), lambda i, p: (i, 0)),
        ),
        compiler_params=pltpu.CompilerParams(
            dimension_semantics=semantics,
        ),
        cost_estimate=pl.CostEstimate(
            flops=101 * Bp,
            transcendentals=12 * Bp,
            bytes_accessed=(2 + 1) * 4 * Bp + _NPARAMS * 4,
        ),
    )(flat, xt)

    return out.reshape(-1)[:B].reshape(B, 1)


def init_params(key):
    """Deterministic init matching the PyTorch module's shapes.

    nn.Linear(in, out) -> weight stored here as (in, out), bias as (1, out),
    uniform(-1/sqrt(in), 1/sqrt(in)) like PyTorch's default init.
    """
    dims = [(2, 4), (4, 4), (4, 4), (4, 1)]
    params = {}
    for i, (fin, fout) in enumerate(dims, start=1):
        key, kw, kb = jax.random.split(key, 3)
        bound = 1.0 / jnp.sqrt(jnp.float32(fin))
        params[f"w{i}"] = jax.random.uniform(
            kw, (fin, fout), jnp.float32, -bound, bound)
        params[f"b{i}"] = jax.random.uniform(
            kb, (1, fout), jnp.float32, -bound, bound)
    return params


if __name__ == "__main__":
    key = jax.random.PRNGKey(0)
    key, kx, kx2 = jax.random.split(key, 3)
    params = init_params(key)

    # Main check: batch large enough to take the Pallas kernel path.
    B = 4096
    x = jax.random.normal(kx, (B, 2), jnp.float32)
    out = jax.block_until_ready(mlp2_forward(x, params))
    ref = mlp2_reference(x, params)
    assert out.shape == (B, 1), out.shape
    assert jnp.allclose(out, ref, atol=1e-5, rtol=1e-5)

    # Ragged / tiny batch forced through the kernel (padding correctness).
    Bs = 8
    xs = jax.random.normal(kx2, (Bs, 2), jnp.float32)
    outs = jax.block_until_ready(mlp2_forward(xs, params, force_kernel=True))
    refs = mlp2_reference(xs, params)
    assert outs.shape == (Bs, 1), outs.shape
    assert jnp.allclose(outs, refs, atol=1e-5, rtol=1e-5)

    # Small-batch fast path (no kernel launch).
    outf = jax.block_until_ready(mlp2_forward(xs, params))
    assert jnp.allclose(outf, refs, atol=1e-5, rtol=1e-5)

    print("KERNEL_OK")
</pallas_src>

<mosaic_0001>
module attributes {stable_mosaic.version = 11 : i64} {
  func.func @mlp2_kernel(%arg0: i32, %arg1: memref<57xf32, #tpu.memory_space<smem>>, %arg2: memref<2x32x128xf32, #tpu.memory_space<vmem>>, %arg3: memref<32x128xf32, #tpu.memory_space<vmem>>) attributes {dimension_semantics = [#tpu.dimension_semantics<parallel>], iteration_bounds = array<i64: 1>, scalar_prefetch = 1 : i64, scratch_operands = 0 : i64, tpu.core_type = #tpu.core_type<tc>, window_params = [{transform_indices = @transform_0, window_bounds = array<i64: 2, 32, 128>}, {transform_indices = @transform_1, window_bounds = array<i64: 32, 128>}]} {
    %c0 = arith.constant 0 : index
    %0 = memref.load %arg1[%c0] : memref<57xf32, #tpu.memory_space<smem>>
    %c1 = arith.constant 1 : index
    %1 = memref.load %arg1[%c1] : memref<57xf32, #tpu.memory_space<smem>>
    %c2 = arith.constant 2 : index
    %2 = memref.load %arg1[%c2] : memref<57xf32, #tpu.memory_space<smem>>
    %c3 = arith.constant 3 : index
    %3 = memref.load %arg1[%c3] : memref<57xf32, #tpu.memory_space<smem>>
    %c4 = arith.constant 4 : index
    %4 = memref.load %arg1[%c4] : memref<57xf32, #tpu.memory_space<smem>>
    %c5 = arith.constant 5 : index
    %5 = memref.load %arg1[%c5] : memref<57xf32, #tpu.memory_space<smem>>
    %c6 = arith.constant 6 : index
    %6 = memref.load %arg1[%c6] : memref<57xf32, #tpu.memory_space<smem>>
    %c7 = arith.constant 7 : index
    %7 = memref.load %arg1[%c7] : memref<57xf32, #tpu.memory_space<smem>>
    %c8 = arith.constant 8 : index
    %8 = memref.load %arg1[%c8] : memref<57xf32, #tpu.memory_space<smem>>
    %c9 = arith.constant 9 : index
    %9 = memref.load %arg1[%c9] : memref<57xf32, #tpu.memory_space<smem>>
    %c10 = arith.constant 10 : index
    %10 = memref.load %arg1[%c10] : memref<57xf32, #tpu.memory_space<smem>>
    %c11 = arith.constant 11 : index
    %11 = memref.load %arg1[%c11] : memref<57xf32, #tpu.memory_space<smem>>
    %c12 = arith.constant 12 : index
    %12 = memref.load %arg1[%c12] : memref<57xf32, #tpu.memory_space<smem>>
    %c13 = arith.constant 13 : index
    %13 = memref.load %arg1[%c13] : memref<57xf32, #tpu.memory_space<smem>>
    %c14 = arith.constant 14 : index
    %14 = memref.load %arg1[%c14] : memref<57xf32, #tpu.memory_space<smem>>
    %c15 = arith.constant 15 : index
    %15 = memref.load %arg1[%c15] : memref<57xf32, #tpu.memory_space<smem>>
    %c16 = arith.constant 16 : index
    %16 = memref.load %arg1[%c16] : memref<57xf32, #tpu.memory_space<smem>>
    %c17 = arith.constant 17 : index
    %17 = memref.load %arg1[%c17] : memref<57xf32, #tpu.memory_space<smem>>
    %c18 = arith.constant 18 : index
    %18 = memref.load %arg1[%c18] : memref<57xf32, #tpu.memory_space<smem>>
    %c19 = arith.constant 19 : index
    %19 = memref.load %arg1[%c19] : memref<57xf32, #tpu.memory_space<smem>>
    %c20 = arith.constant 20 : index
    %20 = memref.load %arg1[%c20] : memref<57xf32, #tpu.memory_space<smem>>
    %c21 = arith.constant 21 : index
    %21 = memref.load %arg1[%c21] : memref<57xf32, #tpu.memory_space<smem>>
    %c22 = arith.constant 22 : index
    %22 = memref.load %arg1[%c22] : memref<57xf32, #tpu.memory_space<smem>>
    %c23 = arith.constant 23 : index
    %23 = memref.load %arg1[%c23] : memref<57xf32, #tpu.memory_space<smem>>
    %c24 = arith.constant 24 : index
    %24 = memref.load %arg1[%c24] : memref<57xf32, #tpu.memory_space<smem>>
    %c25 = arith.constant 25 : index
    %25 = memref.load %arg1[%c25] : memref<57xf32, #tpu.memory_space<smem>>
    %c26 = arith.constant 26 : index
    %26 = memref.load %arg1[%c26] : memref<57xf32, #tpu.memory_space<smem>>
    %c27 = arith.constant 27 : index
    %27 = memref.load %arg1[%c27] : memref<57xf32, #tpu.memory_space<smem>>
    %c28 = arith.constant 28 : index
    %28 = memref.load %arg1[%c28] : memref<57xf32, #tpu.memory_space<smem>>
    %c29 = arith.constant 29 : index
    %29 = memref.load %arg1[%c29] : memref<57xf32, #tpu.memory_space<smem>>
    %c30 = arith.constant 30 : index
    %30 = memref.load %arg1[%c30] : memref<57xf32, #tpu.memory_space<smem>>
    %c31 = arith.constant 31 : index
    %31 = memref.load %arg1[%c31] : memref<57xf32, #tpu.memory_space<smem>>
    %c32 = arith.constant 32 : index
    %32 = memref.load %arg1[%c32] : memref<57xf32, #tpu.memory_space<smem>>
    %c33 = arith.constant 33 : index
    %33 = memref.load %arg1[%c33] : memref<57xf32, #tpu.memory_space<smem>>
    %c34 = arith.constant 34 : index
    %34 = memref.load %arg1[%c34] : memref<57xf32, #tpu.memory_space<smem>>
    %c35 = arith.constant 35 : index
    %35 = memref.load %arg1[%c35] : memref<57xf32, #tpu.memory_space<smem>>
    %c36 = arith.constant 36 : index
    %36 = memref.load %arg1[%c36] : memref<57xf32, #tpu.memory_space<smem>>
    %c37 = arith.constant 37 : index
    %37 = memref.load %arg1[%c37] : memref<57xf32, #tpu.memory_space<smem>>
    %c38 = arith.constant 38 : index
    %38 = memref.load %arg1[%c38] : memref<57xf32, #tpu.memory_space<smem>>
    %c39 = arith.constant 39 : index
    %39 = memref.load %arg1[%c39] : memref<57xf32, #tpu.memory_space<smem>>
    %c40 = arith.constant 40 : index
    %40 = memref.load %arg1[%c40] : memref<57xf32, #tpu.memory_space<smem>>
    %c41 = arith.constant 41 : index
    %41 = memref.load %arg1[%c41] : memref<57xf32, #tpu.memory_space<smem>>
    %c42 = arith.constant 42 : index
    %42 = memref.load %arg1[%c42] : memref<57xf32, #tpu.memory_space<smem>>
    %c43 = arith.constant 43 : index
    %43 = memref.load %arg1[%c43] : memref<57xf32, #tpu.memory_space<smem>>
    %c44 = arith.constant 44 : index
    %44 = memref.load %arg1[%c44] : memref<57xf32, #tpu.memory_space<smem>>
    %c45 = arith.constant 45 : index
    %45 = memref.load %arg1[%c45] : memref<57xf32, #tpu.memory_space<smem>>
    %c46 = arith.constant 46 : index
    %46 = memref.load %arg1[%c46] : memref<57xf32, #tpu.memory_space<smem>>
    %c47 = arith.constant 47 : index
    %47 = memref.load %arg1[%c47] : memref<57xf32, #tpu.memory_space<smem>>
    %c48 = arith.constant 48 : index
    %48 = memref.load %arg1[%c48] : memref<57xf32, #tpu.memory_space<smem>>
    %c49 = arith.constant 49 : index
    %49 = memref.load %arg1[%c49] : memref<57xf32, #tpu.memory_space<smem>>
    %c50 = arith.constant 50 : index
    %50 = memref.load %arg1[%c50] : memref<57xf32, #tpu.memory_space<smem>>
    %c51 = arith.constant 51 : index
    %51 = memref.load %arg1[%c51] : memref<57xf32, #tpu.memory_space<smem>>
    %c52 = arith.constant 52 : index
    %52 = memref.load %arg1[%c52] : memref<57xf32, #tpu.memory_space<smem>>
    %c53 = arith.constant 53 : index
    %53 = memref.load %arg1[%c53] : memref<57xf32, #tpu.memory_space<smem>>
    %c54 = arith.constant 54 : index
    %54 = memref.load %arg1[%c54] : memref<57xf32, #tpu.memory_space<smem>>
    %c55 = arith.constant 55 : index
    %55 = memref.load %arg1[%c55] : memref<57xf32, #tpu.memory_space<smem>>
    %c56 = arith.constant 56 : index
    %56 = memref.load %arg1[%c56] : memref<57xf32, #tpu.memory_space<smem>>
    %c0_i32 = arith.constant 0 : i32
    %c4_i32 = arith.constant 4 : i32
    %57 = arith.addi %c0_i32, %c4_i32 : i32
    %c1_i32 = arith.constant 1 : i32
    scf.for %arg4 = %c0_i32 to %57 step %c1_i32  : i32 {
      %c1_i32_1 = arith.constant 1 : i32
      %58 = arith.muli %arg4, %c1_i32_1 : i32
      %c0_i32_2 = arith.constant 0 : i32
      %59 = arith.addi %c0_i32_2, %58 : i32
      %c8_i32 = arith.constant 8 : i32
      %60 = arith.muli %59, %c8_i32 : i32
      %61 = tpu.assume_multiple %60, 8 : i32
      %c0_3 = arith.constant 0 : index
      %62 = arith.index_cast %61 : i32 to index
      %c0_4 = arith.constant 0 : index
      %63 = vector.load %arg2[%c0_3, %62, %c0_4] : memref<2x32x128xf32, #tpu.memory_space<vmem>>, vector<1x8x128xf32>
      %64 = vector.shape_cast %63 : vector<1x8x128xf32> to vector<8x128xf32>
      %c1_5 = arith.constant 1 : index
      %65 = arith.index_cast %61 : i32 to index
      %c0_6 = arith.constant 0 : index
      %66 = vector.load %arg2[%c1_5, %65, %c0_6] : memref<2x32x128xf32, #tpu.memory_space<vmem>>, vector<1x8x128xf32>
      %67 = vector.shape_cast %66 : vector<1x8x128xf32> to vector<8x128xf32>
      %68 = vector.broadcast %0 : f32 to vector<8x128xf32>
      %69 = arith.mulf %64, %68 : vector<8x128xf32>
      %70 = vector.broadcast %8 : f32 to vector<8x128xf32>
      %71 = arith.addf %69, %70 : vector<8x128xf32>
      %72 = vector.broadcast %4 : f32 to vector<8x128xf32>
      %73 = arith.mulf %67, %72 : vector<8x128xf32>
      %74 = arith.addf %71, %73 : vector<8x128xf32>
      %75 = vector.broadcast %1 : f32 to vector<8x128xf32>
      %76 = arith.mulf %64, %75 : vector<8x128xf32>
      %77 = vector.broadcast %9 : f32 to vector<8x128xf32>
      %78 = arith.addf %76, %77 : vector<8x128xf32>
      %79 = vector.broadcast %5 : f32 to vector<8x128xf32>
      %80 = arith.mulf %67, %79 : vector<8x128xf32>
      %81 = arith.addf %78, %80 : vector<8x128xf32>
      %82 = vector.broadcast %2 : f32 to vector<8x128xf32>
      %83 = arith.mulf %64, %82 : vector<8x128xf32>
      %84 = vector.broadcast %10 : f32 to vector<8x128xf32>
      %85 = arith.addf %83, %84 : vector<8x128xf32>
      %86 = vector.broadcast %6 : f32 to vector<8x128xf32>
      %87 = arith.mulf %67, %86 : vector<8x128xf32>
      %88 = arith.addf %85, %87 : vector<8x128xf32>
      %89 = vector.broadcast %3 : f32 to vector<8x128xf32>
      %90 = arith.mulf %64, %89 : vector<8x128xf32>
      %91 = vector.broadcast %11 : f32 to vector<8x128xf32>
      %92 = arith.addf %90, %91 : vector<8x128xf32>
      %93 = vector.broadcast %7 : f32 to vector<8x128xf32>
      %94 = arith.mulf %67, %93 : vector<8x128xf32>
      %95 = arith.addf %92, %94 : vector<8x128xf32>
      %96 = math.tanh %74 : vector<8x128xf32>
      %97 = math.tanh %81 : vector<8x128xf32>
      %98 = math.tanh %88 : vector<8x128xf32>
      %99 = math.tanh %95 : vector<8x128xf32>
      %100 = vector.broadcast %12 : f32 to vector<8x128xf32>
      %101 = arith.mulf %96, %100 : vector<8x128xf32>
      %102 = vector.broadcast %28 : f32 to vector<8x128xf32>
      %103 = arith.addf %101, %102 : vector<8x128xf32>
      %104 = vector.broadcast %16 : f32 to vector<8x128xf32>
      %105 = arith.mulf %97, %104 : vector<8x128xf32>
      %106 = arith.addf %103, %105 : vector<8x128xf32>
      %107 = vector.broadcast %20 : f32 to vector<8x128xf32>
      %108 = arith.mulf %98, %107 : vector<8x128xf32>
      %109 = arith.addf %106, %108 : vector<8x128xf32>
      %110 = vector.broadcast %24 : f32 to vector<8x128xf32>
      %111 = arith.mulf %99, %110 : vector<8x128xf32>
      %112 = arith.addf %109, %111 : vector<8x128xf32>
      %113 = vector.broadcast %13 : f32 to vector<8x128xf32>
      %114 = arith.mulf %96, %113 : vector<8x128xf32>
      %115 = vector.broadcast %29 : f32 to vector<8x128xf32>
      %116 = arith.addf %114, %115 : vector<8x128xf32>
      %117 = vector.broadcast %17 : f32 to vector<8x128xf32>
      %118 = arith.mulf %97, %117 : vector<8x128xf32>
      %119 = arith.addf %116, %118 : vector<8x128xf32>
      %120 = vector.broadcast %21 : f32 to vector<8x128xf32>
      %121 = arith.mulf %98, %120 : vector<8x128xf32>
      %122 = arith.addf %119, %121 : vector<8x128xf32>
      %123 = vector.broadcast %25 : f32 to vector<8x128xf32>
      %124 = arith.mulf %99, %123 : vector<8x128xf32>
      %125 = arith.addf %122, %124 : vector<8x128xf32>
      %126 = vector.broadcast %14 : f32 to vector<8x128xf32>
      %127 = arith.mulf %96, %126 : vector<8x128xf32>
      %128 = vector.broadcast %30 : f32 to vector<8x128xf32>
      %129 = arith.addf %127, %128 : vector<8x128xf32>
      %130 = vector.broadcast %18 : f32 to vector<8x128xf32>
      %131 = arith.mulf %97, %130 : vector<8x128xf32>
      %132 = arith.addf %129, %131 : vector<8x128xf32>
      %133 = vector.broadcast %22 : f32 to vector<8x128xf32>
      %134 = arith.mulf %98, %133 : vector<8x128xf32>
      %135 = arith.addf %132, %134 : vector<8x128xf32>
      %136 = vector.broadcast %26 : f32 to vector<8x128xf32>
      %137 = arith.mulf %99, %136 : vector<8x128xf32>
      %138 = arith.addf %135, %137 : vector<8x128xf32>
      %139 = vector.broadcast %15 : f32 to vector<8x128xf32>
      %140 = arith.mulf %96, %139 : vector<8x128xf32>
      %141 = vector.broadcast %31 : f32 to vector<8x128xf32>
      %142 = arith.addf %140, %141 : vector<8x128xf32>
      %143 = vector.broadcast %19 : f32 to vector<8x128xf32>
      %144 = arith.mulf %97, %143 : vector<8x128xf32>
      %145 = arith.addf %142, %144 : vector<8x128xf32>
      %146 = vector.broadcast %23 : f32 to vector<8x128xf32>
      %147 = arith.mulf %98, %146 : vector<8x128xf32>
      %148 = arith.addf %145, %147 : vector<8x128xf32>
      %149 = vector.broadcast %27 : f32 to vector<8x128xf32>
      %150 = arith.mulf %99, %149 : vector<8x128xf32>
      %151 = arith.addf %148, %150 : vector<8x128xf32>
      %152 = math.tanh %112 : vector<8x128xf32>
      %153 = math.tanh %125 : vector<8x128xf32>
      %154 = math.tanh %138 : vector<8x128xf32>
      %155 = math.tanh %151 : vector<8x128xf32>
      %156 = vector.broadcast %32 : f32 to vector<8x128xf32>
      %157 = arith.mulf %152, %156 : vector<8x128xf32>
      %158 = vector.broadcast %48 : f32 to vector<8x128xf32>
      %159 = arith.addf %157, %158 : vector<8x128xf32>
      %160 = vector.broadcast %36 : f32 to vector<8x128xf32>
      %161 = arith.mulf %153, %160 : vector<8x128xf32>
      %162 = arith.addf %159, %161 : vector<8x128xf32>
      %163 = vector.broadcast %40 : f32 to vector<8x128xf32>
      %164 = arith.mulf %154, %163 : vector<8x128xf32>
      %165 = arith.addf %162, %164 : vector<8x128xf32>
      %166 = vector.broadcast %44 : f32 to vector<8x128xf32>
      %167 = arith.mulf %155, %166 : vector<8x128xf32>
      %168 = arith.addf %165, %167 : vector<8x128xf32>
      %169 = vector.broadcast %33 : f32 to vector<8x128xf32>
      %170 = arith.mulf %152, %169 : vector<8x128xf32>
      %171 = vector.broadcast %49 : f32 to vector<8x128xf32>
      %172 = arith.addf %170, %171 : vector<8x128xf32>
      %173 = vector.broadcast %37 : f32 to vector<8x128xf32>
      %174 = arith.mulf %153, %173 : vector<8x128xf32>
      %175 = arith.addf %172, %174 : vector<8x128xf32>
      %176 = vector.broadcast %41 : f32 to vector<8x128xf32>
      %177 = arith.mulf %154, %176 : vector<8x128xf32>
      %178 = arith.addf %175, %177 : vector<8x128xf32>
      %179 = vector.broadcast %45 : f32 to vector<8x128xf32>
      %180 = arith.mulf %155, %179 : vector<8x128xf32>
      %181 = arith.addf %178, %180 : vector<8x128xf32>
      %182 = vector.broadcast %34 : f32 to vector<8x128xf32>
      %183 = arith.mulf %152, %182 : vector<8x128xf32>
      %184 = vector.broadcast %50 : f32 to vector<8x128xf32>
      %185 = arith.addf %183, %184 : vector<8x128xf32>
      %186 = vector.broadcast %38 : f32 to vector<8x128xf32>
      %187 = arith.mulf %153, %186 : vector<8x128xf32>
      %188 = arith.addf %185, %187 : vector<8x128xf32>
      %189 = vector.broadcast %42 : f32 to vector<8x128xf32>
      %190 = arith.mulf %154, %189 : vector<8x128xf32>
      %191 = arith.addf %188, %190 : vector<8x128xf32>
      %192 = vector.broadcast %46 : f32 to vector<8x128xf32>
      %193 = arith.mulf %155, %192 : vector<8x128xf32>
      %194 = arith.addf %191, %193 : vector<8x128xf32>
      %195 = vector.broadcast %35 : f32 to vector<8x128xf32>
      %196 = arith.mulf %152, %195 : vector<8x128xf32>
      %197 = vector.broadcast %51 : f32 to vector<8x128xf32>
      %198 = arith.addf %196, %197 : vector<8x128xf32>
      %199 = vector.broadcast %39 : f32 to vector<8x128xf32>
      %200 = arith.mulf %153, %199 : vector<8x128xf32>
      %201 = arith.addf %198, %200 : vector<8x128xf32>
      %202 = vector.broadcast %43 : f32 to vector<8x128xf32>
      %203 = arith.mulf %154, %202 : vector<8x128xf32>
      %204 = arith.addf %201, %203 : vector<8x128xf32>
      %205 = vector.broadcast %47 : f32 to vector<8x128xf32>
      %206 = arith.mulf %155, %205 : vector<8x128xf32>
      %207 = arith.addf %204, %206 : vector<8x128xf32>
      %208 = math.tanh %168 : vector<8x128xf32>
      %209 = math.tanh %181 : vector<8x128xf32>
      %210 = math.tanh %194 : vector<8x128xf32>
      %211 = math.tanh %207 : vector<8x128xf32>
      %212 = vector.broadcast %52 : f32 to vector<8x128xf32>
      %213 = arith.mulf %208, %212 : vector<8x128xf32>
      %214 = vector.broadcast %56 : f32 to vector<8x128xf32>
      %215 = arith.addf %213, %214 : vector<8x128xf32>
      %216 = vector.broadcast %53 : f32 to vector<8x128xf32>
      %217 = arith.mulf %209, %216 : vector<8x128xf32>
      %218 = arith.addf %215, %217 : vector<8x128xf32>
      %219 = vector.broadcast %54 : f32 to vector<8x128xf32>
      %220 = arith.mulf %210, %219 : vector<8x128xf32>
      %221 = arith.addf %218, %220 : vector<8x128xf32>
      %222 = vector.broadcast %55 : f32 to vector<8x128xf32>
      %223 = arith.mulf %211, %222 : vector<8x128xf32>
      %224 = arith.addf %221, %223 : vector<8x128xf32>
      %225 = arith.index_cast %61 : i32 to index
      %c0_7 = arith.constant 0 : index
      %226 = vector.load %arg3[%225, %c0_7] : memref<32x128xf32, #tpu.memory_space<vmem>>, vector<8x128xf32>
      tpu.vector_store %arg3[%225, %c0_7], %224 {strides = array<i32>} : memref<32x128xf32, #tpu.memory_space<vmem>>, vector<8x128xf32>,
    }
    %c4_i32_0 = arith.constant 4 : i32
    return
  }
  func.func @transform_0(%arg0: i32, %arg1: memref<57xf32, #tpu.memory_space<smem>>) -> (i32, i32, i32) {
    %c0_i32 = arith.constant 0 : i32
    %c0_i32_0 = arith.constant 0 : i32
    %c0_i32_1 = arith.constant 0 : i32
    return %c0_i32, %arg0, %c0_i32_0 : i32, i32, i32
  }
  func.func @transform_1(%arg0: i32, %arg1: memref<57xf32, #tpu.memory_space<smem>>) -> (i32, i32) {
    %c0_i32 = arith.constant 0 : i32
    %c0_i32_0 = arith.constant 0 : i32
    return %arg0, %c0_i32 : i32, i32
  }
}

</mosaic_0001>

<bundles_post_ra>
// kernel: tpu_custom_call.1
= control target key start
LH: loop header
LB: loop body
LE: loop exit
PB: predicated region body
PF: predicated region fallthrough
CT: control target
= control target key end

     0   :  { %s695_s0 = inlined_call_operand.hbm [shape: f32[57], index: 0, kind: input, shape index: {}]   ;;  %s696_s1 = inlined_call_operand.hbm [shape: f32[2,32,128], index: 1, kind: input, shape index: {}]   ;;  %s697_s2 = inlined_call_operand.hbm [shape: f32[32,128], index: 2, kind: output, shape index: {}]  }
   0x1   :  { %702 = sst [smem:[#allocation53_spill]] %s697_s2  ;;  %s381_s11 = scalar_lea.hbm %s695_s0, 16 }
   0x2   :  { %p382_p0 = scmp.ne.s32.totalorder %s695_s0, %s381_s11  ;;  %p385_p1 = scmp.lt.u32.totalorder %s381_s11, %s695_s0 }
   0x4   :  { %p387_p2 = pnand %p385_p1, %p382_p0 }
   0x6   :  { %390 = shalt.err (!%p387_p2)  }
   0x7   :  { %s449_s16 = smov [#allocation3]  }
   0x8   :  { %8 = dma.hbm_to_smem %s695_s0, 16, %s449_s16, [#allocation2] }
   0x9   :  { %439 = dma.done.wait [#allocation2], 16 }
   0xa   :  { %440 = vsyncadd [#allocation2], 4294967280 }
   0xb   :  { %10 = sfence }
   0xc   :  { %11 = vsyncpa [#allocation5], 0 }
   0xd   :  { %12 = vsyncpa [#allocation6], 0  ;;  %s450_s19 = smov [#allocation4]   ;;  %s391_s23 = scalar_lea.hbm %s696_s1, 1024 }
   0xe   :  { %s18_s20 = sshll.u32 %s450_s19, 4  ;;  %p392_p3 = scmp.ne.s32.totalorder %s696_s1, %s391_s23  ;;  %s19_s20 = int_to_ptr.vmem [resolvable:$true] %s18_s20 }
   0xf   :  { %p395_p4 = scmp.lt.u32.totalorder %s391_s23, %s696_s1 }
  0x11   :  { %p397_p5 = pnand %p395_p4, %p392_p3 }
  0x13   :  { %400 = shalt.err (!%p397_p5)
}
  0x14   :  { %s401_s0 = scalar_lea.vmem %s19_s20, 1024  ;;  %p406_p7 = scmp.lt.s32.totalorder %s19_s20, %s19_s20 }
  0x15   :  { %p402_p6 = scmp.ne.s32.totalorder %s19_s20, %s401_s0  ;;  %p407_p8 = scmp.lt.s32.totalorder %s401_s0, %s401_s0 }
  0x17   :  { %p408_p9 = por %p407_p8, %p406_p7 }
  0x19   :  { %p409_p10 = pnand %p408_p9, %p402_p6 }
  0x1b   :  { %412 = shalt.err (!%p409_p10)
}
  0x1c   :  { %s698_s28 = smov 128   ;;  %s699_s29 = smov 8  }
  0x1d   :  { %24 = dma.hbm_to_vmem [thread:$0]  %s696_s1, 1024, %s19_s20, [#allocation5], %s698_s28, %s698_s28, %s699_s29  }
  0x1e   :  { %441 = dma.done.wait [#allocation5], 1024  }
  0x1f   :  { %442 = vsyncadd [#allocation5], 4294966272  ;;  %s496_s4 = sld [smem:[#allocation3]]  ;;  %s498_s5 = sld [smem:[#allocation3 + $0x1]] }
  0x20   :  { %s500_s6 = sld [smem:[#allocation3 + $0x2]]  ;;  %s502_s7 = sld [smem:[#allocation3 + $0x3]] }
  0x21   :  { %s504_s8 = sld [smem:[#allocation3 + $0x4]]  ;;  %s506_s9 = sld [smem:[#allocation3 + $0x5]] }
  0x22   :  { %s508_s10 = sld [smem:[#allocation3 + $0x6]]  ;;  %s510_s11 = sld [smem:[#allocation3 + $0x7]] }
  0x23   :  { %s512_s12 = sld [smem:[#allocation3 + $0x8]]  ;;  %s514_s1 = sld [smem:[#allocation3 + $0x9]] }
  0x24   :  { %s516_s13 = sld [smem:[#allocation3 + $0xa]]  ;;  %s518_s14 = sld [smem:[#allocation3 + $0xb]] }
  0x25   :  { %703 = sst [smem:[#allocation11_spill]] %s496_s4  ;;  %s520_s15 = sld [smem:[#allocation3 + $0xc]] }
  0x26   :  { %704 = sst [smem:[#allocation12_spill]] %s498_s5  ;;  %s522_s16 = sld [smem:[#allocation3 + $0xd]] }
  0x27   :  { %705 = sst [smem:[#allocation13_spill]] %s500_s6  ;;  %s524_s17 = sld [smem:[#allocation3 + $0xe]] }
  0x28   :  { %706 = sst [smem:[#allocation14_spill]] %s502_s7  ;;  %s526_s18 = sld [smem:[#allocation3 + $0xf]] }
  0x29   :  { %707 = sst [smem:[#allocation15_spill]] %s504_s8  ;;  %s528_s19 = sld [smem:[#allocation3 + $0x10]] }
  0x2a   :  { %708 = sst [smem:[#allocation16_spill]] %s506_s9  ;;  %s530_s20 = sld [smem:[#allocation3 + $0x11]] }
  0x2b   :  { %709 = sst [smem:[#allocation17_spill]] %s508_s10  ;;  %s532_s21 = sld [smem:[#allocation3 + $0x12]] }
  0x2c   :  { %710 = sst [smem:[#allocation18_spill]] %s510_s11  ;;  %s534_s22 = sld [smem:[#allocation3 + $0x13]] }
  0x2d   :  { %711 = sst [smem:[#allocation19_spill]] %s512_s12  ;;  %s536_s23 = sld [smem:[#allocation3 + $0x14]] }
  0x2e   :  { %712 = sst [smem:[#allocation20_spill]] %s514_s1  ;;  %s538_s24 = sld [smem:[#allocation3 + $0x15]] }
  0x2f   :  { %713 = sst [smem:[#allocation21_spill]] %s516_s13  ;;  %s540_s25 = sld [smem:[#allocation3 + $0x16]] }
  0x30   :  { %714 = sst [smem:[#allocation22_spill]] %s518_s14  ;;  %s542_s26 = sld [smem:[#allocation3 + $0x17]] }
  0x31   :  { %715 = sst [smem:[#allocation23_spill]] %s520_s15  ;;  %s544_s27 = sld [smem:[#allocation3 + $0x18]] }
  0x32   :  { %716 = sst [smem:[#allocation24_spill]] %s524_s17  ;;  %s546_s0 = sld [smem:[#allocation3 + $0x19]] }
  0x33   :  { %717 = sst [smem:[#allocation25_spill]] %s526_s18  ;;  %s548_s30 = sld [smem:[#allocation3 + $0x1a]] }
  0x34   :  { %718 = sst [smem:[#allocation26_spill]] %s532_s21  ;;  %s550_s3 = sld [smem:[#allocation3 + $0x1b]] }
  0x35   :  { %719 = sst [smem:[#allocation27_spill]] %s534_s22  ;;  %s552_s28 = sld [smem:[#allocation3 + $0x1c]] }
  0x36   :  { %720 = sst [smem:[#allocation28_spill]] %s538_s24  ;;  %s554_s29 = sld [smem:[#allocation3 + $0x1d]] }
  0x37   :  { %721 = sst [smem:[#allocation29_spill]] %s540_s25  ;;  %s556_s2 = sld [smem:[#allocation3 + $0x1e]] }
  0x38   :  { %722 = sst [smem:[#allocation30_spill]] %s542_s26  ;;  %s558_s22 = sld [smem:[#allocation3 + $0x1f]] }
  0x39   :  { %723 = sst [smem:[#allocation31_spill]] %s546_s0  ;;  %s560_s21 = sld [smem:[#allocation3 + $0x20]] }
  0x3a   :  { %724 = sst [smem:[#allocation32_spill]] %s548_s30  ;;  %s562_s25 = sld [smem:[#allocation3 + $0x21]] }
  0x3b   :  { %725 = sst [smem:[#allocation33_spill]] %s550_s3  ;;  %s564_s26 = sld [smem:[#allocation3 + $0x22]] }
  0x3c   :  { %s566_s18 = sld [smem:[#allocation3 + $0x23]]  ;;  %s568_s0 = sld [smem:[#allocation3 + $0x24]] }
  0x3d   :  { %726 = sst [smem:[#allocation34_spill]] %s556_s2  ;;  %s570_s30 = sld [smem:[#allocation3 + $0x25]] }
  0x3e   :  { %727 = sst [smem:[#allocation35_spill]] %s558_s22  ;;  %s572_s3 = sld [smem:[#allocation3 + $0x26]] }
  0x3f   :  { %728 = sst [smem:[#allocation36_spill]] %s560_s21  ;;  %s574_s17 = sld [smem:[#allocation3 + $0x27]] }
  0x40   :  { %729 = sst [smem:[#allocation37_spill]] %s562_s25  ;;  %s576_s24 = sld [smem:[#allocation3 + $0x28]] }
  0x41   :  { %730 = sst [smem:[#allocation38_spill]] %s564_s26  ;;  %s578_s2 = sld [smem:[#allocation3 + $0x29]] }
  0x42   :  { %731 = sst [smem:[#allocation39_spill]] %s566_s18  ;;  %s580_s22 = sld [smem:[#allocation3 + $0x2a]] }
  0x43   :  { %732 = sst [smem:[#allocation40_spill]] %s568_s0  ;;  %s582_s21 = sld [smem:[#allocation3 + $0x2b]] }
  0x44   :  { %733 = sst [smem:[#allocation41_spill]] %s570_s30  ;;  %s584_s25 = sld [smem:[#allocation3 + $0x2c]] }
  0x45   :  { %734 = sst [smem:[#allocation42_spill]] %s572_s3  ;;  %s586_s26 = sld [smem:[#allocation3 + $0x2d]] }
  0x46   :  { %735 = sst [smem:[#allocation43_spill]] %s574_s17  ;;  %s588_s18 = sld [smem:[#allocation3 + $0x2e]] }
  0x47   :  { %736 = sst [smem:[#allocation44_spill]] %s576_s24  ;;  %s590_s0 = sld [smem:[#allocation3 + $0x2f]] }
  0x48   :  { %737 = sst [smem:[#allocation45_spill]] %s578_s2  ;;  %s592_s30 = sld [smem:[#allocation3 + $0x30]] }
  0x49   :  { %738 = sst [smem:[#allocation46_spill]] %s580_s22  ;;  %s594_s3 = sld [smem:[#allocation3 + $0x31]] }
  0x4a   :  { %739 = sst [smem:[#allocation47_spill]] %s582_s21  ;;  %s596_s17 = sld [smem:[#allocation3 + $0x32]] }
  0x4b   :  { %740 = sst [smem:[#allocation48_spill]] %s584_s25  ;;  %s598_s24 = sld [smem:[#allocation3 + $0x33]] }
  0x4c   :  { %741 = sst [smem:[#allocation49_spill]] %s586_s26  ;;  %s600_s2 = sld [smem:[#allocation3 + $0x34]] }
  0x4d   :  { %742 = sst [smem:[#allocation50_spill]] %s588_s18  ;;  %s602_s22 = sld [smem:[#allocation3 + $0x35]] }
  0x4e   :  { %s604_s21 = sld [smem:[#allocation3 + $0x36]]  ;;  %s606_s25 = sld [smem:[#allocation3 + $0x37]] }
  0x4f   :  { %s608_s26 = sld [smem:[#allocation3 + $0x38]]  ;;  %s610_s18 = smov 0  }
  0x54   :  { %743 = sst [smem:[#allocation51_spill]] %s604_s21 }
  0x55   :  { %744 = sst [smem:[#allocation52_spill]] %s606_s25 }
  0x56 LB: > { %s745_s4 = sld [smem:[#allocation11_spill]]  ;;  %s747_s8 = sld [smem:[#allocation15_spill]]  ;;  %v131_v31 = vstv %s552_s28  ;;  %v133_v32 = vstv %s528_s19  ;;  %v136_v33 = vstv %s536_s23  ;;  %v139_v34 = vstv %s544_s27  ;;  %s447_s18 = sphi %s610_s18, %s90_s18  }
  0x57   : > { %s746_s12 = sld [smem:[#allocation19_spill]]  ;;  %s748_s5 = sld [smem:[#allocation12_spill]]  ;;  %v142_v35 = vstv %s522_s16  ;;  %v144_v36 = vstv %s554_s29  ;;  %v146_v37 = vstv %s530_s20 }
  0x58   : > { %s749_s1 = sld [smem:[#allocation20_spill]]  ;;  %s750_s9 = sld [smem:[#allocation16_spill]] }
  0x59   : > { %s751_s6 = sld [smem:[#allocation13_spill]]  ;;  %s752_s10 = sld [smem:[#allocation17_spill]] }
  0x5a   : > { %s753_s7 = sld [smem:[#allocation14_spill]]  ;;  %s754_s11 = sld [smem:[#allocation18_spill]] }
  0x5b   : > { %s755_s13 = sld [smem:[#allocation21_spill]]  ;;  %s756_s14 = sld [smem:[#allocation22_spill]] }
  0x5c   : > { %v97_v0 = vstv %s745_s4  ;;  %s701_s25 = sshll.u32 %s447_s18, 3  ;;  %v101_v2 = vstv %s747_s8  ;;  %s757_s15 = sld [smem:[#allocation23_spill]] }
  0x5d   : > { %v99_v1 = vstv %s746_s12  ;;  %v104_v3 = vstv %s748_s5  ;;  %s92_s21 = scalar_lea.vmem [#allocation4], %s701_s25  ;;  %s759_s25 = sld [smem:[#allocation24_spill]] }
  0x5e   : > { %v106_v4 = vstv %s749_s1  ;;  %v108_v5 = vstv %s750_s9  ;;  %v93_v10 = vld [vmem:[%s92_s21] sm:$0xff]  ;;  %s760_s1 = sld [smem:[#allocation25_spill]]  ;;  %s761_s4 = sld [smem:[#allocation31_spill]] }
  0x5f   : > { %v111_v6 = vstv %s751_s6  ;;  %v115_v7 = vstv %s752_s10  ;;  %v343_v11 = vld [vmem:[%s92_s21 + $0x20] sm:$0xff]  ;;  %v98_v14 = vmul.f32 %v97_v0, %v93_v10  ;;  %v105_v16 = vmul.f32 %v104_v3, %v93_v10  ;;  %s758_s21 = sld [smem:[#allocation28_spill]]  ;;  %s762_s5 = sld [smem:[#allocation34_spill]] }
  0x60   : > { %v118_v8 = vstv %s753_s7  ;;  %v122_v9 = vstv %s754_s11  ;;  %v102_v15 = vmul.f32 %v343_v11, %v101_v2  ;;  %v109_v17 = vmul.f32 %v343_v11, %v108_v5  ;;  %s763_s6 = sld [smem:[#allocation26_spill]]  ;;  %s764_s7 = sld [smem:[#allocation27_spill]] }
  0x61   : > { %v113_v12 = vstv %s755_s13  ;;  %v120_v13 = vstv %s756_s14  ;;  %v112_v18 = vmul.f32 %v111_v6, %v93_v10  ;;  %v116_v19 = vmul.f32 %v343_v11, %v115_v7  ;;  %s765_s8 = sld [smem:[#allocation29_spill]]  ;;  %s766_s9 = sld [smem:[#allocation32_spill]] }
  0x62   : > { %v119_v20 = vmul.f32 %v118_v8, %v93_v10  ;;  %v123_v21 = vmul.f32 %v343_v11, %v122_v9  ;;  %v100_v22 = vadd.f32 %v99_v1, %v98_v14  ;;  %v107_v23 = vadd.f32 %v106_v4, %v105_v16  ;;  %s767_s10 = sld [smem:[#allocation35_spill]]  ;;  %s768_s11 = sld [smem:[#allocation30_spill]] }
  0x63   : > { %v114_v24 = vadd.f32 %v113_v12, %v112_v18  ;;  %v129_v30 = vstv %s757_s15  ;;  %v155_v39 = vstv %s759_s25  ;;  %s769_s12 = sld [smem:[#allocation33_spill]]  ;;  %s780_s25 = sld [smem:[#allocation42_spill]] }
  0x64   : > { %v121_v25 = vadd.f32 %v120_v13, %v119_v20  ;;  %v103_v26 = vadd.f32 %v102_v15, %v100_v22  ;;  %v110_v27 = vadd.f32 %v109_v17, %v107_v23  ;;  %v168_v40 = vstv %s760_s1  ;;  %s779_s1 = sld [smem:[#allocation49_spill]]  ;;  %s782_s13 = sld [smem:[#allocation46_spill]] }
  0x65   : > { %v117_v28 = vadd.f32 %v116_v19, %v114_v24  ;;  %v149_v38 = vstv %s758_s21  ;;  %v152_v41 = vstv %s761_s4  ;;  %v157_v42 = vstv %s762_s5  ;;  %s770_s4 = sld [smem:[#allocation36_spill]]  ;;  %s771_s5 = sld [smem:[#allocation40_spill]] }
  0x66   : > { %v124_v29 = vadd.f32 %v123_v21, %v121_v25  ;;  %357 = vtanh.f32 %v103_v26  ;;  %v159_v43 = vstv %s763_s6  ;;  %v172_v44 = vstv %s764_s7  ;;  %s772_s6 = sld [smem:[#allocation44_spill]]  ;;  %s773_s7 = sld [smem:[#allocation48_spill]] }
  0x67   : > { %359 = vtanh.f32 %v110_v27  ;;  %v162_v46 = vstv %s765_s8  ;;  %v165_v47 = vstv %s766_s9  ;;  %s774_s8 = sld [smem:[#allocation37_spill]]  ;;  %s775_s9 = sld [smem:[#allocation41_spill]]  ;;  %v187_v23 = vstv %s592_s30 }
  0x68   : > { %361 = vtanh.f32 %v117_v28  ;;  %v170_v48 = vstv %s767_s10  ;;  %v175_v49 = vstv %s768_s11  ;;  %s776_s10 = sld [smem:[#allocation45_spill]]  ;;  %s777_s11 = sld [smem:[#allocation38_spill]]  ;;  %v200_v28 = vstv %s594_s3 }
  0x69   : > { %363 = vtanh.f32 %v124_v29  ;;  %v178_v4 = vstv %s769_s12  ;;  %s778_s12 = sld [smem:[#allocation39_spill]]  ;;  %s781_s21 = sld [smem:[#allocation43_spill]] }
  0x6a   : > { %s783_s14 = sld [smem:[#allocation50_spill]]  ;;  %s784_s15 = sld [smem:[#allocation47_spill]] }
  0x6b   : > { %v185_v22 = vstv %s770_s4  ;;  %v189_v24 = vstv %s771_s5 }
  0x6c   : > { %v192_v25 = vstv %s772_s6  ;;  %v195_v26 = vstv %s773_s7 }
  0x6d   : > { %v198_v27 = vstv %s774_s8  ;;  %v202_v29 = vstv %s775_s9 }
  0x70   : > { %v358_v45 = vpop.eup %357 }
  0x71   : > { %v360_v50 = vpop.eup %359  ;;  %v130_v51 = vmul.f32 %v358_v45, %v129_v30  ;;  %v143_v52 = vmul.f32 %v358_v45, %v142_v35  ;;  %v156_v53 = vmul.f32 %v358_v45, %v155_v39  ;;  %v169_v54 = vmul.f32 %v358_v45, %v168_v40 }
  0x72   : > { %v362_v55 = vpop.eup %361  ;;  %v134_v56 = vmul.f32 %v360_v50, %v133_v32  ;;  %v147_v57 = vmul.f32 %v360_v50, %v146_v37  ;;  %v160_v58 = vmul.f32 %v360_v50, %v159_v43  ;;  %v173_v59 = vmul.f32 %v360_v50, %v172_v44 }
  0x73   : > { %v364_v60 = vpop.eup %363  ;;  %v132_v61 = vadd.f32 %v131_v31, %v130_v51  ;;  %v137_v62 = vmul.f32 %v362_v55, %v136_v33  ;;  %v145_v63 = vadd.f32 %v144_v36, %v143_v52  ;;  %v150_v0 = vmul.f32 %v362_v55, %v149_v38 }
  0x74   : > { %v140_v1 = vmul.f32 %v364_v60, %v139_v34  ;;  %v158_v2 = vadd.f32 %v157_v42, %v156_v53  ;;  %v163_v3 = vmul.f32 %v362_v55, %v162_v46  ;;  %v153_v7 = vmul.f32 %v364_v60, %v152_v41 }
  0x75   : > { %v135_v5 = vadd.f32 %v134_v56, %v132_v61  ;;  %v148_v6 = vadd.f32 %v147_v57, %v145_v63  ;;  %v171_v8 = vadd.f32 %v170_v48, %v169_v54  ;;  %v166_v10 = vmul.f32 %v364_v60, %v165_v47 }
  0x76   : > { %v161_v9 = vadd.f32 %v160_v58, %v158_v2  ;;  %v176_v11 = vmul.f32 %v362_v55, %v175_v49  ;;  %v179_v15 = vmul.f32 %v364_v60, %v178_v4  ;;  %v205_v30 = vstv %s776_s10 }
  0x77   : > { %v138_v12 = vadd.f32 %v137_v62, %v135_v5  ;;  %v151_v13 = vadd.f32 %v150_v0, %v148_v6  ;;  %v174_v14 = vadd.f32 %v173_v59, %v171_v8  ;;  %v211_v31 = vstv %s777_s11 }
  0x78   : > { %v164_v16 = vadd.f32 %v163_v3, %v161_v9  ;;  %v224_v32 = vstv %s778_s12  ;;  %v208_v33 = vstv %s779_s1  ;;  %v213_v34 = vstv %s596_s17 }
  0x79   : > { %v141_v17 = vadd.f32 %v140_v1, %v138_v12  ;;  %v154_v18 = vadd.f32 %v153_v7, %v151_v13  ;;  %v177_v19 = vadd.f32 %v176_v11, %v174_v14  ;;  %v215_v35 = vstv %s780_s25 }
  0x7a   : > { %v167_v20 = vadd.f32 %v166_v10, %v164_v16  ;;  %v228_v36 = vstv %s781_s21  ;;  %v218_v38 = vstv %s782_s13  ;;  %v221_v39 = vstv %s783_s14  ;;  %s785_s13 = sld [smem:[#allocation51_spill]]  ;;  %s786_s14 = sld [smem:[#allocation52_spill]] }
  0x7b   : > { %v180_v21 = vadd.f32 %v179_v15, %v177_v19  ;;  %365 = vtanh.f32 %v141_v17  ;;  %v226_v40 = vstv %s598_s24  ;;  %v231_v41 = vstv %s784_s15  ;;  %s787_s15 = sshll.u32 %s447_s18, 3  ;;  %s90_s18 = sadd.s32 1, %s447_s18  }
  0x7c   : > { %367 = vtanh.f32 %v154_v18  ;;  %v234_v60 = vstv %s590_s0  ;;  %v241_v14 = vstv %s600_s2  ;;  %v245_v15 = vstv %s602_s22  ;;  %s254_s4 = scalar_lea.vmem [#allocation7], %s787_s15  ;;  %p87_p11 = scmp.ge.s32.totalorder %s90_s18, 4  }
  0x7d   : > { %369 = vtanh.f32 %v167_v20  ;;  %v243_v17 = vstv %s608_s26  ;;  %s453_s5 = smov (%p87_p11), [#allocation7]  }
  0x7e   : > { %371 = vtanh.f32 %v180_v21  ;;  %s261_s6 = sshll.u32 (%p87_p11), %s453_s5, 4  ;;  %s262_s6 = int_to_ptr.vmem [resolvable:$true] %s261_s6 }
  0x7f   :  { %s413_s7 = scalar_lea.vmem (%p87_p11), %s262_s6, 512  ;;  %p418_p13 = scmp.lt.s32.totalorder (%p87_p11), %s262_s6, %s262_s6 }
  0x80   : > { %v248_v18 = vstv %s785_s13  ;;  %p414_p12 = scmp.ne.s32.totalorder (%p87_p11), %s262_s6, %s413_s7  ;;  %p419_p0 = scmp.lt.s32.totalorder (%p87_p11), %s413_s7, %s413_s7 }
  0x82   :  { %p420_p1 = por (%p87_p11), %p419_p0, %p418_p13 }
  0x84   :  { %p421_p2 = pnand (%p87_p11), %p420_p1, %p414_p12 }
  0x85   : > { %v366_v37 = vpop.eup %365 }
  0x86   : > { %v368_v42 = vpop.eup %367  ;;  %v186_v43 = vmul.f32 %v366_v37, %v185_v22  ;;  %v199_v44 = vmul.f32 %v366_v37, %v198_v27  ;;  %v212_v45 = vmul.f32 %v366_v37, %v211_v31  ;;  %v225_v46 = vmul.f32 %v366_v37, %v224_v32 }
  0x87   : > { %v370_v47 = vpop.eup %369  ;;  %v190_v48 = vmul.f32 %v368_v42, %v189_v24  ;;  %v203_v49 = vmul.f32 %v368_v42, %v202_v29  ;;  %v216_v50 = vmul.f32 %v368_v42, %v215_v35  ;;  %v229_v51 = vmul.f32 %v368_v42, %v228_v36 }
  0x88   : > { %v372_v52 = vpop.eup %371  ;;  %v188_v53 = vadd.f32 %v187_v23, %v186_v43  ;;  %v193_v54 = vmul.f32 %v370_v47, %v192_v25  ;;  %v201_v55 = vadd.f32 %v200_v28, %v199_v44  ;;  %v206_v56 = vmul.f32 %v370_v47, %v205_v30 }
  0x89   : > { %v196_v57 = vmul.f32 %v372_v52, %v195_v26  ;;  %v214_v58 = vadd.f32 %v213_v34, %v212_v45  ;;  %v219_v59 = vmul.f32 %v370_v47, %v218_v38  ;;  %v209_v63 = vmul.f32 %v372_v52, %v208_v33 }
  0x8a   : > { %v191_v61 = vadd.f32 %v190_v48, %v188_v53  ;;  %v204_v62 = vadd.f32 %v203_v49, %v201_v55  ;;  %v227_v0 = vadd.f32 %v226_v40, %v225_v46  ;;  %v222_v2 = vmul.f32 %v372_v52, %v221_v39 }
  0x8b   : > { %v217_v1 = vadd.f32 %v216_v50, %v214_v58  ;;  %v232_v3 = vmul.f32 %v370_v47, %v231_v41  ;;  %v235_v7 = vmul.f32 %v372_v52, %v234_v60  ;;  %v251_v23 = vstv %s786_s14 }
  0x8c   : > { %v194_v4 = vadd.f32 %v193_v54, %v191_v61  ;;  %v207_v5 = vadd.f32 %v206_v56, %v204_v62  ;;  %v230_v6 = vadd.f32 %v229_v51, %v227_v0 }
  0x8d   : > { %v220_v8 = vadd.f32 %v219_v59, %v217_v1 }
  0x8e   : > { %v197_v9 = vadd.f32 %v196_v57, %v194_v4  ;;  %v210_v10 = vadd.f32 %v209_v63, %v207_v5  ;;  %v233_v11 = vadd.f32 %v232_v3, %v230_v6 }
  0x8f   : > { %v223_v12 = vadd.f32 %v222_v2, %v220_v8 }
  0x90   : > { %v236_v13 = vadd.f32 %v235_v7, %v233_v11  ;;  %373 = vtanh.f32 %v197_v9 }
  0x91   : > { %375 = vtanh.f32 %v210_v10 }
  0x92   : > { %377 = vtanh.f32 %v223_v12 }
  0x93   : > { %379 = vtanh.f32 %v236_v13 }
  0x9a   : > { %v374_v16 = vpop.eup %373 }
  0x9b   : > { %v376_v19 = vpop.eup %375  ;;  %v242_v20 = vmul.f32 %v374_v16, %v241_v14 }
  0x9c   : > { %v378_v21 = vpop.eup %377  ;;  %v246_v22 = vmul.f32 %v376_v19, %v245_v15 }
  0x9d   : > { %v380_v24 = vpop.eup %379  ;;  %v244_v25 = vadd.f32 %v243_v17, %v242_v20  ;;  %v249_v26 = vmul.f32 %v378_v21, %v248_v18 }
  0x9e   : > { %v252_v28 = vmul.f32 %v380_v24, %v251_v23 }
  0x9f   : > { %v247_v27 = vadd.f32 %v246_v22, %v244_v25  ;;  %89 = sbr.rel (!%p87_p11) target bundleno = 86 (0x56), region = 38 }
  0xa1   : > { %v250_v29 = vadd.f32 %v249_v26, %v247_v27 }
  0xa3   : > { %v253_v30 = vadd.f32 %v252_v28, %v250_v29 }
  0xa5   : > { %255 = vst [vmem:[%s254_s4] sm:$0xff] %v253_v30 }
  0xa6   :  { %424 = shalt.err (!%p421_p2)
}
  0xa7   :  { %s788_s10 = sld [smem:[#allocation53_spill]] }
  0xad   :  { %s425_s11 = scalar_lea.hbm %s788_s10, 512 }
  0xae   :  { %p426_p3 = scmp.ne.s32.totalorder %s788_s10, %s425_s11  ;;  %p429_p4 = scmp.lt.u32.totalorder %s425_s11, %s788_s10 }
  0xb0   :  { %p431_p5 = pnand %p429_p4, %p426_p3 }
  0xb2   :  { %434 = shalt.err (!%p431_p5)
}
  0xb3   :  { %s789_s2 = smov 8   ;;  %s790_s28 = smov 128  }
  0xb4   :  { %267 = dma.vmem_to_hbm [thread:$0]  %s262_s6, 512, %s788_s10, [#allocation6], %s790_s28, %s790_s28, %s789_s2  }
  0xb5   :  { %443 = dma.done.wait [#allocation6], 512  }
  0xb6   :  { %444 = vsyncadd [#allocation6], 4294966784 }
  0xb7   :  { %271 = vsyncpa [#allocation5], 1 }
  0xb8   :  { %272 = vsyncpa [#allocation6], 1 }

</bundles_post_ra>
